<compile_context>
chip_gen: v6e
topology: v6e:2x2x1
jax: 0.10.0
libtpu: 0.0.40
codegen_flags: <defaults>
</compile_context>

<pallas_src>
import math

import jax
import jax.numpy as jnp
import numpy as np
from jax.experimental import pallas as pl
from jax.experimental.pallas import tpu as pltpu

EPS_BN = 1e-5  # nn.BatchNorm2d default eps


# ----------------------------------------------------------------------------
# Kernel A: stacked complex conv GEMM + BN statistics accumulation
# ----------------------------------------------------------------------------
def conv_stats_kernel(x_ref, w_ref, zr_ref, zi_ref, stats_ref):
    c8 = zr_ref.shape[0]          # channel dim padded to a multiple of 8
    w = w_ref[...]                # [2*C8, K8]  rows = [Wr ; Wi]
    xr = x_ref[0]                 # [K8, TILE_M]
    xi = x_ref[1]                 # [K8, TILE_M]

    # Two stacked GEMMs (N = TILE_M on lanes -> good MXU occupancy + lane-dense
    # result).  f32 kept for accuracy; bf16 inputs are an option on v6e/v7x.
    yr = jnp.dot(w, xr, preferred_element_type=jnp.float32)   # [2*C8, TM]: [rr ; ir]
    yi = jnp.dot(w, xi, preferred_element_type=jnp.float32)   # [2*C8, TM]: [ri ; ii]

    zr = yr[:c8, :] - yi[c8:, :]   # conv_r(xr) - conv_i(xi)
    zi = yi[:c8, :] + yr[c8:, :]   # conv_r(xi) + conv_i(xr)

    zr_ref[...] = zr               # lane-dense [C8, TILE_M] stores
    zi_ref[...] = zi

    # One-pass BN statistics accumulated across the M-tile grid axis.
    @pl.when(pl.program_id(0) == 0)
    def _():
        stats_ref[...] = jnp.zeros_like(stats_ref)

    stats_ref[0] += jnp.sum(zr, axis=1, keepdims=True)        # sum  (real)
    stats_ref[1] += jnp.sum(zr * zr, axis=1, keepdims=True)   # sum2 (real)
    stats_ref[2] += jnp.sum(zi, axis=1, keepdims=True)        # sum  (imag)
    stats_ref[3] += jnp.sum(zi * zi, axis=1, keepdims=True)   # sum2 (imag)


# ----------------------------------------------------------------------------
# Kernel B: normalize (precomputed per-channel affine) + PReLU
# ----------------------------------------------------------------------------
def bn_prelu_kernel(zr_ref, zi_ref, scale_ref, shift_ref, alpha_ref,
                    or_ref, oi_ref):
    zr = zr_ref[...]
    zi = zi_ref[...]

    yr = zr * scale_ref[:, 0:1] + shift_ref[:, 0:1]
    yi = zi * scale_ref[:, 1:2] + shift_ref[:, 1:2]

    a_r = alpha_ref[:, 0:1]
    a_i = alpha_ref[:, 1:2]
    or_ref[...] = jnp.where(yr >= 0, yr, a_r * yr)
    oi_ref[...] = jnp.where(yi >= 0, yi, a_i * yi)


# ----------------------------------------------------------------------------
# Glue: transposed im2col (causal in time), K-major / M-on-lanes layout
# ----------------------------------------------------------------------------
def im2col_t(x, Fk, Tk, sf, dil):
    """x: [B, C, F, T] -> patches [K, M] with K=(c,kf,kt), M=(b,f_out,t_out)."""
    B, C, F, T = x.shape
    pf = (Fk - 1) * dil // 2
    pt = (Tk - 1) * dil
    xp = jnp.pad(x, ((0, 0), (0, 0), (pf, pf), (pt, 0)))  # causal left-pad in time
    F_out = (F + 2 * pf - dil * (Fk - 1) - 1) // sf + 1
    T_out = T
    cols = []
    for kf in range(Fk):
        for kt in range(Tk):
            sl = xp[:, :,
                    kf * dil: kf * dil + (F_out - 1) * sf + 1: sf,
                    kt * dil: kt * dil + T_out]
            cols.append(sl)                        # [B, C, F_out, T_out]
    p = jnp.stack(cols, axis=2)                    # [B, C, Fk*Tk, F_out, T_out]
    p = p.reshape(B, C * Fk * Tk, F_out, T_out)    # K order = (c, kf, kt)
    p = p.transpose(1, 0, 2, 3).reshape(C * Fk * Tk, B * F_out * T_out)
    return p, F_out, T_out
    # TODO(synk): patch extraction still runs as XLA ops in HBM; building the
    # Fk*Tk taps inside the kernel (or allow_input_fusion) would cut the
    # ~Fk*Tk x HBM read amplification further.


def _round_up(x, m):
    return ((x + m - 1) // m) * m


def complex_conv_norm_act(xr, xi, p, Fk, Tk, sf, dil, tile_m=512):
    B, C_in, F, T = xr.shape
    C_out = p["wr"].shape[0]
    C8 = _round_up(C_out, 8)            # sublane-aligned channel padding

    xr_p, F_out, T_out = im2col_t(xr, Fk, Tk, sf, dil)   # [K, M]
    xi_p, _, _ = im2col_t(xi, Fk, Tk, sf, dil)
    K, M = xr_p.shape
    K8 = _round_up(K, 8)                # no 128-padding of the contraction dim

    m128 = _round_up(M, 128)
    tile_m = min(tile_m, m128)          # tile_m stays a multiple of 128
    grid_m = -(-m128 // tile_m)
    M_pad = grid_m * tile_m

    def pad_patch(a):
        return jnp.pad(a, ((0, K8 - K), (0, M_pad - M)))

    x_stk = jnp.stack([pad_patch(xr_p), pad_patch(xi_p)], axis=0)  # [2, K8, M_pad]

    # Stacked weights [Wr ; Wi] with channel rows padded to C8.
    def w_mat(w):
        return w.reshape(C_out, C_in * Fk * Tk)

    w2 = jnp.zeros((2 * C8, K8), jnp.float32)
    w2 = w2.at[:C_out, :K].set(w_mat(p["wr"]))
    w2 = w2.at[C8:C8 + C_out, :K].set(w_mat(p["wi"]))
    # NOTE: conv biases (p["br"], p["bi"]) are intentionally dropped — a
    # per-channel constant added before training-mode BatchNorm is exactly
    # cancelled by the mean subtraction (and keeps zero-padded rows stats-free).

    flops = int(2 * 2 * (2 * C8) * K8 * M_pad)          # two GEMMs over all tiles
    bytes_acc = int(4 * (x_stk.size + w2.size + 2 * C8 * M_pad + 4 * C8))

    zr_raw, zi_raw, stats = pl.pallas_call(
        conv_stats_kernel,
        out_shape=(jax.ShapeDtypeStruct((C8, M_pad), jnp.float32),
                   jax.ShapeDtypeStruct((C8, M_pad), jnp.float32),
                   jax.ShapeDtypeStruct((4, C8, 1), jnp.float32)),
        grid_spec=pltpu.PrefetchScalarGridSpec(
            num_scalar_prefetch=0,
            grid=(grid_m,),
            in_specs=[pl.BlockSpec((2, K8, tile_m), lambda i: (0, 0, i)),
                      pl.BlockSpec((2 * C8, K8), lambda i: (0, 0))],
            out_specs=(pl.BlockSpec((C8, tile_m), lambda i: (0, i)),
                       pl.BlockSpec((C8, tile_m), lambda i: (0, i)),
                       pl.BlockSpec((4, C8, 1), lambda i: (0, 0, 0)))),
        compiler_params=pltpu.CompilerParams(
            dimension_semantics=("arbitrary",)),   # stats accumulator is carried
        cost_estimate=pl.CostEstimate(flops=flops, transcendentals=0,
                                      bytes_accessed=bytes_acc),
    )(x_stk, w2)

    # Finalize BN affine in XLA (tiny per-channel math). One-pass variance,
    # clamped at 0 before rsqrt.
    s = stats.reshape(4, C8)[:, :C_out]
    inv_m = jnp.float32(1.0 / M)
    mean_r, mean_i = s[0] * inv_m, s[2] * inv_m
    var_r = jnp.maximum(s[1] * inv_m - mean_r * mean_r, 0.0)
    var_i = jnp.maximum(s[3] * inv_m - mean_i * mean_i, 0.0)
    sc_r = jax.lax.rsqrt(var_r + EPS_BN)
    sc_i = jax.lax.rsqrt(var_i + EPS_BN)

    def pad_c(a):   # [C_out, 2] -> [C8, 2]
        return jnp.pad(a, ((0, C8 - C_out), (0, 0)))

    scale = pad_c(jnp.stack([sc_r, sc_i], axis=1))
    shift = pad_c(jnp.stack([-mean_r * sc_r, -mean_i * sc_i], axis=1))
    alpha = pad_c(jnp.stack([jnp.full((C_out,), p["a_r"], jnp.float32),
                             jnp.full((C_out,), p["a_i"], jnp.float32)], axis=1))

    out_r, out_i = pl.pallas_call(
        bn_prelu_kernel,
        out_shape=(jax.ShapeDtypeStruct((C8, M_pad), jnp.float32),
                   jax.ShapeDtypeStruct((C8, M_pad), jnp.float32)),
        grid_spec=pltpu.PrefetchScalarGridSpec(
            num_scalar_prefetch=0,
            grid=(grid_m,),
            in_specs=[pl.BlockSpec((C8, tile_m), lambda i: (0, i)),
                      pl.BlockSpec((C8, tile_m), lambda i: (0, i)),
                      pl.BlockSpec((C8, 2), lambda i: (0, 0)),
                      pl.BlockSpec((C8, 2), lambda i: (0, 0)),
                      pl.BlockSpec((C8, 2), lambda i: (0, 0))],
            out_specs=(pl.BlockSpec((C8, tile_m), lambda i: (0, i)),
                       pl.BlockSpec((C8, tile_m), lambda i: (0, i)))),
        compiler_params=pltpu.CompilerParams(
            dimension_semantics=("parallel",)),    # megacore-shardable on v7x
    )(zr_raw, zi_raw, scale, shift, alpha)

    def to_nchw(a):     # [C8, M_pad] -> [B, C_out, F_out, T_out]
        return (a[:C_out, :M]
                .reshape(C_out, B, F_out, T_out)
                .transpose(1, 0, 2, 3))

    return to_nchw(out_r), to_nchw(out_i)


def encoder_forward(xr, xi, params, Fk, Tk, sf, dil):
    skips_r, skips_i = [], []
    out_r, out_i = xr, xi
    for p in params:
        out_r, out_i = complex_conv_norm_act(out_r, out_i, p, Fk, Tk, sf, dil)
        skips_r.append(out_r)
        skips_i.append(out_i)
    skips_r.reverse()
    skips_i.reverse()
    return out_r, out_i, skips_r, skips_i


# ----------------------------------------------------------------------------
# Pure-JAX reference (lax.conv) used only to validate the Pallas pipeline
# ----------------------------------------------------------------------------
def _ref_causal_conv(x, w, b, sf, dil):
    Fk, Tk = w.shape[2], w.shape[3]
    pf = (Fk - 1) * dil // 2
    pt = (Tk - 1) * dil
    y = jax.lax.conv_general_dilated(
        x, w, window_strides=(sf, 1),
        padding=((pf, pf), (pt, pt)),
        rhs_dilation=(dil, dil),
        dimension_numbers=("NCHW", "OIHW", "NCHW"),
        precision=jax.lax.Precision.HIGHEST)
    y = y + b[None, :, None, None]
    if pt > 0:
        y = y[:, :, :, :-pt]        # Chomp2d('conv'): drop the end of time axis
    return y


def _ref_block(xr, xi, p, sf, dil):
    cr_r = _ref_causal_conv(xr, p["wr"], p["br"], sf, dil)
    ci_i = _ref_causal_conv(xi, p["wi"], p["bi"], sf, dil)
    cr_i = _ref_causal_conv(xi, p["wr"], p["br"], sf, dil)
    ci_r = _ref_causal_conv(xr, p["wi"], p["bi"], sf, dil)
    zr = cr_r - ci_i
    zi = cr_i + ci_r

    def bn(z):
        mean = jnp.mean(z, axis=(0, 2, 3), keepdims=True)
        var = jnp.mean((z - mean) ** 2, axis=(0, 2, 3), keepdims=True)
        return (z - mean) / jnp.sqrt(var + EPS_BN)

    zr, zi = bn(zr), bn(zi)
    zr = jnp.where(zr >= 0, zr, p["a_r"] * zr)
    zi = jnp.where(zi >= 0, zi, p["a_i"] * zi)
    return zr, zi


def encoder_ref(xr, xi, params, Fk, Tk, sf, dil):
    skips_r, skips_i = [], []
    out_r, out_i = xr, xi
    for p in params:
        out_r, out_i = _ref_block(out_r, out_i, p, sf, dil)
        skips_r.append(out_r)
        skips_i.append(out_i)
    skips_r.reverse()
    skips_i.reverse()
    return out_r, out_i, skips_r, skips_i


# ----------------------------------------------------------------------------
# Deterministic parameter init (shapes per module __init__)
# ----------------------------------------------------------------------------
def init_params(key, num_convs, channel_sizes, Fk, Tk):
    params = []
    c_in = 1
    for i in range(num_convs):
        c_out = channel_sizes[i]
        key, k0, k1, k2, k3 = jax.random.split(key, 5)
        fan_in = c_in * Fk * Tk
        bound = 1.0 / math.sqrt(fan_in)
        params.append(dict(
            wr=jax.random.uniform(k0, (c_out, c_in, Fk, Tk), jnp.float32, -bound, bound),
            wi=jax.random.uniform(k1, (c_out, c_in, Fk, Tk), jnp.float32, -bound, bound),
            br=jax.random.uniform(k2, (c_out,), jnp.float32, -bound, bound),
            bi=jax.random.uniform(k3, (c_out,), jnp.float32, -bound, bound),
            a_r=jnp.float32(0.25),   # nn.PReLU() default
            a_i=jnp.float32(0.25),
        ))
        c_in = c_out
    # TODO(synk): BatchNorm running-stat buffers (momentum updates) are training
    # bookkeeping, not part of the forward output; only batch-stat normalization
    # is implemented.
    return params


# ----------------------------------------------------------------------------
if __name__ == "__main__":
    # Encoder(num_convs=2, channel_sizes_encoder=[4, 8], freq_kernel_size=5,
    #         time_kernel_size=2, stride=(2, 1), norm_type='BN', dilation=1)
    B, F, T = 2, 16, 8
    num_convs = 2
    channel_sizes = [4, 8]
    Fk, Tk = 5, 2
    stride_f, dil = 2, 1

    key = jax.random.PRNGKey(0)
    kx, ky, kp = jax.random.split(key, 3)
    input_real = jax.random.normal(kx, (B, 1, F, T), jnp.float32)
    input_imag = jax.random.normal(ky, (B, 1, F, T), jnp.float32)

    params = init_params(kp, num_convs, channel_sizes, Fk, Tk)

    fwd = jax.jit(lambda a, b: encoder_forward(a, b, params, Fk, Tk, stride_f, dil))
    out_r, out_i, skips_r, skips_i = fwd(input_real, input_imag)
    jax.block_until_ready((out_r, out_i, skips_r, skips_i))

    # Validate against a pure-JAX reference of the PyTorch forward.
    ref_r, ref_i, ref_sr, ref_si = encoder_ref(
        input_real, input_imag, params, Fk, Tk, stride_f, dil)
    np.testing.assert_allclose(np.asarray(out_r), np.asarray(ref_r), atol=2e-2, rtol=2e-2)
    np.testing.assert_allclose(np.asarray(out_i), np.asarray(ref_i), atol=2e-2, rtol=2e-2)
    for a, b in zip(skips_r, ref_sr):
        np.testing.assert_allclose(np.asarray(a), np.asarray(b), atol=2e-2, rtol=2e-2)
    for a, b in zip(skips_i, ref_si):
        np.testing.assert_allclose(np.asarray(a), np.asarray(b), atol=2e-2, rtol=2e-2)

    print("KERNEL_OK")
</pallas_src>

<mosaic_0001>
module attributes {stable_mosaic.version = 11 : i64} {
  func.func @conv_stats_kernel(%arg0: i32, %arg1: memref<2x16x128xf32, #tpu.memory_space<vmem>>, %arg2: memref<16x16xf32, #tpu.memory_space<vmem>>, %arg3: memref<8x128xf32, #tpu.memory_space<vmem>>, %arg4: memref<8x128xf32, #tpu.memory_space<vmem>>, %arg5: memref<4x8x1xf32, #tpu.memory_space<vmem>>) attributes {dimension_semantics = [#tpu.dimension_semantics<arbitrary>], iteration_bounds = array<i64: 1>, scalar_prefetch = 0 : i64, scratch_operands = 0 : i64, tpu.core_type = #tpu.core_type<tc>, window_params = [{transform_indices = @transform_0, window_bounds = array<i64: 2, 16, 128>}, {pipeline_mode = #tpu.pipeline_mode<synchronous>, transform_indices = @transform_1, window_bounds = array<i64: 16, 16>}, {transform_indices = @transform_2, window_bounds = array<i64: 8, 128>}, {transform_indices = @transform_3, window_bounds = array<i64: 8, 128>}, {pipeline_mode = #tpu.pipeline_mode<synchronous>, transform_indices = @transform_4, window_bounds = array<i64: 4, 8, 1>}]} {
    %c0 = arith.constant 0 : index
    %c0_0 = arith.constant 0 : index
    %0 = vector.load %arg2[%c0, %c0_0] : memref<16x16xf32, #tpu.memory_space<vmem>>, vector<16x16xf32>
    %c0_1 = arith.constant 0 : index
    %c0_2 = arith.constant 0 : index
    %c0_3 = arith.constant 0 : index
    %1 = vector.load %arg1[%c0_1, %c0_2, %c0_3] : memref<2x16x128xf32, #tpu.memory_space<vmem>>, vector<1x16x128xf32>
    %2 = vector.shape_cast %1 : vector<1x16x128xf32> to vector<16x128xf32>
    %c1 = arith.constant 1 : index
    %c0_4 = arith.constant 0 : index
    %c0_5 = arith.constant 0 : index
    %3 = vector.load %arg1[%c1, %c0_4, %c0_5] : memref<2x16x128xf32, #tpu.memory_space<vmem>>, vector<1x16x128xf32>
    %4 = vector.shape_cast %3 : vector<1x16x128xf32> to vector<16x128xf32>
    %cst = arith.constant dense<0.000000e+00> : vector<16x128xf32>
    %5 = tpu.matmul %0, %2, %cst {dimension_numbers = #tpu.dot_dimension_numbers<[1], [0], [0], [1], [0, 0, 1, 1], [], []>} : vector<16x16xf32>, vector<16x128xf32>, vector<16x128xf32> -> vector<16x128xf32>
    %cst_6 = arith.constant dense<0.000000e+00> : vector<16x128xf32>
    %6 = tpu.matmul %0, %4, %cst_6 {dimension_numbers = #tpu.dot_dimension_numbers<[1], [0], [0], [1], [0, 0, 1, 1], [], []>} : vector<16x16xf32>, vector<16x128xf32>, vector<16x128xf32> -> vector<16x128xf32>
    %7 = vector.extract_strided_slice %5 {offsets = [0, 0], sizes = [8, 128], strides = [1, 1]} : vector<16x128xf32> to vector<8x128xf32>
    %8 = vector.extract_strided_slice %6 {offsets = [8, 0], sizes = [8, 128], strides = [1, 1]} : vector<16x128xf32> to vector<8x128xf32>
    %9 = arith.subf %7, %8 : vector<8x128xf32>
    %10 = vector.extract_strided_slice %6 {offsets = [0, 0], sizes = [8, 128], strides = [1, 1]} : vector<16x128xf32> to vector<8x128xf32>
    %11 = vector.extract_strided_slice %5 {offsets = [8, 0], sizes = [8, 128], strides = [1, 1]} : vector<16x128xf32> to vector<8x128xf32>
    %12 = arith.addf %10, %11 : vector<8x128xf32>
    %c0_7 = arith.constant 0 : index
    %c0_8 = arith.constant 0 : index
    %13 = vector.load %arg3[%c0_7, %c0_8] : memref<8x128xf32, #tpu.memory_space<vmem>>, vector<8x128xf32>
    tpu.vector_store %arg3[%c0_7, %c0_8], %9 {strides = array<i32>} : memref<8x128xf32, #tpu.memory_space<vmem>>, vector<8x128xf32>,
    %c0_9 = arith.constant 0 : index
    %c0_10 = arith.constant 0 : index
    %14 = vector.load %arg4[%c0_9, %c0_10] : memref<8x128xf32, #tpu.memory_space<vmem>>, vector<8x128xf32>
    tpu.vector_store %arg4[%c0_9, %c0_10], %12 {strides = array<i32>} : memref<8x128xf32, #tpu.memory_space<vmem>>, vector<8x128xf32>,
    %c0_i32 = arith.constant 0 : i32
    %15 = arith.cmpi eq, %arg0, %c0_i32 : i32
    %16 = arith.extui %15 : i1 to i32
    %c0_i32_11 = arith.constant 0 : i32
    %17 = arith.cmpi ne, %16, %c0_i32_11 : i32
    scf.if %17 {
      %cst_38 = arith.constant 0.000000e+00 : f32
      %52 = vector.broadcast %cst_38 : f32 to vector<4x8x1xf32>
      %c0_39 = arith.constant 0 : index
      %c0_40 = arith.constant 0 : index
      %c0_41 = arith.constant 0 : index
      %53 = vector.load %arg5[%c0_39, %c0_40, %c0_41] : memref<4x8x1xf32, #tpu.memory_space<vmem>>, vector<4x8x1xf32>
      tpu.vector_store %arg5[%c0_39, %c0_40, %c0_41], %52 {strides = array<i32>} : memref<4x8x1xf32, #tpu.memory_space<vmem>>, vector<4x8x1xf32>,
    } else {
    }
    %c0_12 = arith.constant 0 : index
    %c0_13 = arith.constant 0 : index
    %c0_14 = arith.constant 0 : index
    %18 = vector.load %arg5[%c0_12, %c0_13, %c0_14] : memref<4x8x1xf32, #tpu.memory_space<vmem>>, vector<1x8x1xf32>
    %19 = vector.shape_cast %18 : vector<1x8x1xf32> to vector<8x1xf32>
    %cst_15 = arith.constant dense<0.000000e+00> : vector<8xf32>
    %20 = vector.multi_reduction <add>, %9, %cst_15 [1] : vector<8x128xf32> to vector<8xf32>
    %21 = vector.shape_cast %20 : vector<8xf32> to vector<8x1xf32>
    %22 = arith.addf %19, %21 : vector<8x1xf32>
    %c0_16 = arith.constant 0 : index
    %c0_17 = arith.constant 0 : index
    %c0_18 = arith.constant 0 : index
    %23 = vector.load %arg5[%c0_16, %c0_17, %c0_18] : memref<4x8x1xf32, #tpu.memory_space<vmem>>, vector<1x8x1xf32>
    %24 = vector.shape_cast %23 : vector<1x8x1xf32> to vector<8x1xf32>
    %25 = vector.shape_cast %22 : vector<8x1xf32> to vector<1x8x1xf32>
    tpu.vector_store %arg5[%c0_16, %c0_17, %c0_18], %25 {strides = array<i32>} : memref<4x8x1xf32, #tpu.memory_space<vmem>>, vector<1x8x1xf32>,
    %c1_19 = arith.constant 1 : index
    %c0_20 = arith.constant 0 : index
    %c0_21 = arith.constant 0 : index
    %26 = vector.load %arg5[%c1_19, %c0_20, %c0_21] : memref<4x8x1xf32, #tpu.memory_space<vmem>>, vector<1x8x1xf32>
    %27 = vector.shape_cast %26 : vector<1x8x1xf32> to vector<8x1xf32>
    %28 = arith.mulf %9, %9 : vector<8x128xf32>
    %cst_22 = arith.constant dense<0.000000e+00> : vector<8xf32>
    %29 = vector.multi_reduction <add>, %28, %cst_22 [1] : vector<8x128xf32> to vector<8xf32>
    %30 = vector.shape_cast %29 : vector<8xf32> to vector<8x1xf32>
    %31 = arith.addf %27, %30 : vector<8x1xf32>
    %c1_23 = arith.constant 1 : index
    %c0_24 = arith.constant 0 : index
    %c0_25 = arith.constant 0 : index
    %32 = vector.load %arg5[%c1_23, %c0_24, %c0_25] : memref<4x8x1xf32, #tpu.memory_space<vmem>>, vector<1x8x1xf32>
    %33 = vector.shape_cast %32 : vector<1x8x1xf32> to vector<8x1xf32>
    %34 = vector.shape_cast %31 : vector<8x1xf32> to vector<1x8x1xf32>
    tpu.vector_store %arg5[%c1_23, %c0_24, %c0_25], %34 {strides = array<i32>} : memref<4x8x1xf32, #tpu.memory_space<vmem>>, vector<1x8x1xf32>,
    %c2 = arith.constant 2 : index
    %c0_26 = arith.constant 0 : index
    %c0_27 = arith.constant 0 : index
    %35 = vector.load %arg5[%c2, %c0_26, %c0_27] : memref<4x8x1xf32, #tpu.memory_space<vmem>>, vector<1x8x1xf32>
    %36 = vector.shape_cast %35 : vector<1x8x1xf32> to vector<8x1xf32>
    %cst_28 = arith.constant dense<0.000000e+00> : vector<8xf32>
    %37 = vector.multi_reduction <add>, %12, %cst_28 [1] : vector<8x128xf32> to vector<8xf32>
    %38 = vector.shape_cast %37 : vector<8xf32> to vector<8x1xf32>
    %39 = arith.addf %36, %38 : vector<8x1xf32>
    %c2_29 = arith.constant 2 : index
    %c0_30 = arith.constant 0 : index
    %c0_31 = arith.constant 0 : index
    %40 = vector.load %arg5[%c2_29, %c0_30, %c0_31] : memref<4x8x1xf32, #tpu.memory_space<vmem>>, vector<1x8x1xf32>
    %41 = vector.shape_cast %40 : vector<1x8x1xf32> to vector<8x1xf32>
    %42 = vector.shape_cast %39 : vector<8x1xf32> to vector<1x8x1xf32>
    tpu.vector_store %arg5[%c2_29, %c0_30, %c0_31], %42 {strides = array<i32>} : memref<4x8x1xf32, #tpu.memory_space<vmem>>, vector<1x8x1xf32>,
    %c3 = arith.constant 3 : index
    %c0_32 = arith.constant 0 : index
    %c0_33 = arith.constant 0 : index
    %43 = vector.load %arg5[%c3, %c0_32, %c0_33] : memref<4x8x1xf32, #tpu.memory_space<vmem>>, vector<1x8x1xf32>
    %44 = vector.shape_cast %43 : vector<1x8x1xf32> to vector<8x1xf32>
    %45 = arith.mulf %12, %12 : vector<8x128xf32>
    %cst_34 = arith.constant dense<0.000000e+00> : vector<8xf32>
    %46 = vector.multi_reduction <add>, %45, %cst_34 [1] : vector<8x128xf32> to vector<8xf32>
    %47 = vector.shape_cast %46 : vector<8xf32> to vector<8x1xf32>
    %48 = arith.addf %44, %47 : vector<8x1xf32>
    %c3_35 = arith.constant 3 : index
    %c0_36 = arith.constant 0 : index
    %c0_37 = arith.constant 0 : index
    %49 = vector.load %arg5[%c3_35, %c0_36, %c0_37] : memref<4x8x1xf32, #tpu.memory_space<vmem>>, vector<1x8x1xf32>
    %50 = vector.shape_cast %49 : vector<1x8x1xf32> to vector<8x1xf32>
    %51 = vector.shape_cast %48 : vector<8x1xf32> to vector<1x8x1xf32>
    tpu.vector_store %arg5[%c3_35, %c0_36, %c0_37], %51 {strides = array<i32>} : memref<4x8x1xf32, #tpu.memory_space<vmem>>, vector<1x8x1xf32>,
    return
  }
  func.func @transform_0(%arg0: i32) -> (i32, i32, i32) {
    %c0_i32 = arith.constant 0 : i32
    %c0_i32_0 = arith.constant 0 : i32
    %c0_i32_1 = arith.constant 0 : i32
    return %c0_i32, %c0_i32_0, %arg0 : i32, i32, i32
  }
  func.func @transform_1(%arg0: i32) -> (i32, i32) {
    %c0_i32 = arith.constant 0 : i32
    %c0_i32_0 = arith.constant 0 : i32
    %c0_i32_1 = arith.constant 0 : i32
    return %c0_i32, %c0_i32_0 : i32, i32
  }
  func.func @transform_2(%arg0: i32) -> (i32, i32) {
    %c0_i32 = arith.constant 0 : i32
    %c0_i32_0 = arith.constant 0 : i32
    return %c0_i32, %arg0 : i32, i32
  }
  func.func @transform_3(%arg0: i32) -> (i32, i32) {
    %c0_i32 = arith.constant 0 : i32
    %c0_i32_0 = arith.constant 0 : i32
    return %c0_i32, %arg0 : i32, i32
  }
  func.func @transform_4(%arg0: i32) -> (i32, i32, i32) {
    %c0_i32 = arith.constant 0 : i32
    %c0_i32_0 = arith.constant 0 : i32
    %c0_i32_1 = arith.constant 0 : i32
    %c0_i32_2 = arith.constant 0 : i32
    return %c0_i32, %c0_i32_0, %c0_i32_1 : i32, i32, i32
  }
}

module attributes {stable_mosaic.version = 11 : i64} {
  func.func @bn_prelu_kernel(%arg0: i32, %arg1: memref<8x128xf32, #tpu.memory_space<vmem>>, %arg2: memref<8x128xf32, #tpu.memory_space<vmem>>, %arg3: memref<8x2xf32, #tpu.memory_space<vmem>>, %arg4: memref<8x2xf32, #tpu.memory_space<vmem>>, %arg5: memref<8x2xf32, #tpu.memory_space<vmem>>, %arg6: memref<8x128xf32, #tpu.memory_space<vmem>>, %arg7: memref<8x128xf32, #tpu.memory_space<vmem>>) attributes {dimension_semantics = [#tpu.dimension_semantics<parallel>], iteration_bounds = array<i64: 1>, scalar_prefetch = 0 : i64, scratch_operands = 0 : i64, tpu.core_type = #tpu.core_type<tc>, window_params = [{transform_indices = @transform_0, window_bounds = array<i64: 8, 128>}, {transform_indices = @transform_1, window_bounds = array<i64: 8, 128>}, {pipeline_mode = #tpu.pipeline_mode<synchronous>, transform_indices = @transform_2, window_bounds = array<i64: 8, 2>}, {pipeline_mode = #tpu.pipeline_mode<synchronous>, transform_indices = @transform_3, window_bounds = array<i64: 8, 2>}, {pipeline_mode = #tpu.pipeline_mode<synchronous>, transform_indices = @transform_4, window_bounds = array<i64: 8, 2>}, {transform_indices = @transform_5, window_bounds = array<i64: 8, 128>}, {transform_indices = @transform_6, window_bounds = array<i64: 8, 128>}]} {
    %c0 = arith.constant 0 : index
    %c0_0 = arith.constant 0 : index
    %0 = vector.load %arg1[%c0, %c0_0] : memref<8x128xf32, #tpu.memory_space<vmem>>, vector<8x128xf32>
    %c0_1 = arith.constant 0 : index
    %c0_2 = arith.constant 0 : index
    %1 = vector.load %arg2[%c0_1, %c0_2] : memref<8x128xf32, #tpu.memory_space<vmem>>, vector<8x128xf32>
    %c0_3 = arith.constant 0 : index
    %c0_4 = arith.constant 0 : index
    %2 = vector.load %arg3[%c0_3, %c0_4] : memref<8x2xf32, #tpu.memory_space<vmem>>, vector<8x1xf32>
    %3 = vector.broadcast %2 : vector<8x1xf32> to vector<8x128xf32>
    %4 = arith.mulf %0, %3 : vector<8x128xf32>
    %c0_5 = arith.constant 0 : index
    %c0_6 = arith.constant 0 : index
    %5 = vector.load %arg4[%c0_5, %c0_6] : memref<8x2xf32, #tpu.memory_space<vmem>>, vector<8x1xf32>
    %6 = vector.broadcast %5 : vector<8x1xf32> to vector<8x128xf32>
    %7 = arith.addf %4, %6 : vector<8x128xf32>
    %c0_7 = arith.constant 0 : index
    %c1 = arith.constant 1 : index
    %8 = vector.load %arg3[%c0_7, %c1] : memref<8x2xf32, #tpu.memory_space<vmem>>, vector<8x1xf32>
    %9 = vector.broadcast %8 : vector<8x1xf32> to vector<8x128xf32>
    %10 = arith.mulf %1, %9 : vector<8x128xf32>
    %c0_8 = arith.constant 0 : index
    %c1_9 = arith.constant 1 : index
    %11 = vector.load %arg4[%c0_8, %c1_9] : memref<8x2xf32, #tpu.memory_space<vmem>>, vector<8x1xf32>
    %12 = vector.broadcast %11 : vector<8x1xf32> to vector<8x128xf32>
    %13 = arith.addf %10, %12 : vector<8x128xf32>
    %c0_10 = arith.constant 0 : index
    %c0_11 = arith.constant 0 : index
    %14 = vector.load %arg5[%c0_10, %c0_11] : memref<8x2xf32, #tpu.memory_space<vmem>>, vector<8x1xf32>
    %c0_12 = arith.constant 0 : index
    %c1_13 = arith.constant 1 : index
    %15 = vector.load %arg5[%c0_12, %c1_13] : memref<8x2xf32, #tpu.memory_space<vmem>>, vector<8x1xf32>
    %cst = arith.constant 0.000000e+00 : f32
    %16 = vector.broadcast %cst : f32 to vector<8x128xf32>
    %17 = arith.cmpf oge, %7, %16 : vector<8x128xf32>
    %18 = vector.broadcast %14 : vector<8x1xf32> to vector<8x128xf32>
    %19 = arith.mulf %18, %7 : vector<8x128xf32>
    %20 = arith.select %17, %7, %19 : vector<8x128xi1>, vector<8x128xf32>
    %c0_14 = arith.constant 0 : index
    %c0_15 = arith.constant 0 : index
    %21 = vector.load %arg6[%c0_14, %c0_15] : memref<8x128xf32, #tpu.memory_space<vmem>>, vector<8x128xf32>
    tpu.vector_store %arg6[%c0_14, %c0_15], %20 {strides = array<i32>} : memref<8x128xf32, #tpu.memory_space<vmem>>, vector<8x128xf32>,
    %cst_16 = arith.constant 0.000000e+00 : f32
    %22 = vector.broadcast %cst_16 : f32 to vector<8x128xf32>
    %23 = arith.cmpf oge, %13, %22 : vector<8x128xf32>
    %24 = vector.broadcast %15 : vector<8x1xf32> to vector<8x128xf32>
    %25 = arith.mulf %24, %13 : vector<8x128xf32>
    %26 = arith.select %23, %13, %25 : vector<8x128xi1>, vector<8x128xf32>
    %c0_17 = arith.constant 0 : index
    %c0_18 = arith.constant 0 : index
    %27 = vector.load %arg7[%c0_17, %c0_18] : memref<8x128xf32, #tpu.memory_space<vmem>>, vector<8x128xf32>
    tpu.vector_store %arg7[%c0_17, %c0_18], %26 {strides = array<i32>} : memref<8x128xf32, #tpu.memory_space<vmem>>, vector<8x128xf32>,
    return
  }
  func.func @transform_0(%arg0: i32) -> (i32, i32) {
    %c0_i32 = arith.constant 0 : i32
    %c0_i32_0 = arith.constant 0 : i32
    return %c0_i32, %arg0 : i32, i32
  }
  func.func @transform_1(%arg0: i32) -> (i32, i32) {
    %c0_i32 = arith.constant 0 : i32
    %c0_i32_0 = arith.constant 0 : i32
    return %c0_i32, %arg0 : i32, i32
  }
  func.func @transform_2(%arg0: i32) -> (i32, i32) {
    %c0_i32 = arith.constant 0 : i32
    %c0_i32_0 = arith.constant 0 : i32
    %c0_i32_1 = arith.constant 0 : i32
    return %c0_i32, %c0_i32_0 : i32, i32
  }
  func.func @transform_3(%arg0: i32) -> (i32, i32) {
    %c0_i32 = arith.constant 0 : i32
    %c0_i32_0 = arith.constant 0 : i32
    %c0_i32_1 = arith.constant 0 : i32
    return %c0_i32, %c0_i32_0 : i32, i32
  }
  func.func @transform_4(%arg0: i32) -> (i32, i32) {
    %c0_i32 = arith.constant 0 : i32
    %c0_i32_0 = arith.constant 0 : i32
    %c0_i32_1 = arith.constant 0 : i32
    return %c0_i32, %c0_i32_0 : i32, i32
  }
  func.func @transform_5(%arg0: i32) -> (i32, i32) {
    %c0_i32 = arith.constant 0 : i32
    %c0_i32_0 = arith.constant 0 : i32
    return %c0_i32, %arg0 : i32, i32
  }
  func.func @transform_6(%arg0: i32) -> (i32, i32) {
    %c0_i32 = arith.constant 0 : i32
    %c0_i32_0 = arith.constant 0 : i32
    return %c0_i32, %arg0 : i32, i32
  }
}

module attributes {stable_mosaic.version = 11 : i64} {
  func.func @conv_stats_kernel(%arg0: i32, %arg1: memref<2x40x128xf32, #tpu.memory_space<vmem>>, %arg2: memref<16x40xf32, #tpu.memory_space<vmem>>, %arg3: memref<8x128xf32, #tpu.memory_space<vmem>>, %arg4: memref<8x128xf32, #tpu.memory_space<vmem>>, %arg5: memref<4x8x1xf32, #tpu.memory_space<vmem>>) attributes {dimension_semantics = [#tpu.dimension_semantics<arbitrary>], iteration_bounds = array<i64: 1>, scalar_prefetch = 0 : i64, scratch_operands = 0 : i64, tpu.core_type = #tpu.core_type<tc>, window_params = [{transform_indices = @transform_0, window_bounds = array<i64: 2, 40, 128>}, {pipeline_mode = #tpu.pipeline_mode<synchronous>, transform_indices = @transform_1, window_bounds = array<i64: 16, 40>}, {transform_indices = @transform_2, window_bounds = array<i64: 8, 128>}, {transform_indices = @transform_3, window_bounds = array<i64: 8, 128>}, {pipeline_mode = #tpu.pipeline_mode<synchronous>, transform_indices = @transform_4, window_bounds = array<i64: 4, 8, 1>}]} {
    %c0 = arith.constant 0 : index
    %c0_0 = arith.constant 0 : index
    %0 = vector.load %arg2[%c0, %c0_0] : memref<16x40xf32, #tpu.memory_space<vmem>>, vector<16x40xf32>
    %c0_1 = arith.constant 0 : index
    %c0_2 = arith.constant 0 : index
    %c0_3 = arith.constant 0 : index
    %1 = vector.load %arg1[%c0_1, %c0_2, %c0_3] : memref<2x40x128xf32, #tpu.memory_space<vmem>>, vector<1x40x128xf32>
    %2 = vector.shape_cast %1 : vector<1x40x128xf32> to vector<40x128xf32>
    %c1 = arith.constant 1 : index
    %c0_4 = arith.constant 0 : index
    %c0_5 = arith.constant 0 : index
    %3 = vector.load %arg1[%c1, %c0_4, %c0_5] : memref<2x40x128xf32, #tpu.memory_space<vmem>>, vector<1x40x128xf32>
    %4 = vector.shape_cast %3 : vector<1x40x128xf32> to vector<40x128xf32>
    %cst = arith.constant dense<0.000000e+00> : vector<16x128xf32>
    %5 = tpu.matmul %0, %2, %cst {dimension_numbers = #tpu.dot_dimension_numbers<[1], [0], [0], [1], [0, 0, 1, 1], [], []>} : vector<16x40xf32>, vector<40x128xf32>, vector<16x128xf32> -> vector<16x128xf32>
    %cst_6 = arith.constant dense<0.000000e+00> : vector<16x128xf32>
    %6 = tpu.matmul %0, %4, %cst_6 {dimension_numbers = #tpu.dot_dimension_numbers<[1], [0], [0], [1], [0, 0, 1, 1], [], []>} : vector<16x40xf32>, vector<40x128xf32>, vector<16x128xf32> -> vector<16x128xf32>
    %7 = vector.extract_strided_slice %5 {offsets = [0, 0], sizes = [8, 128], strides = [1, 1]} : vector<16x128xf32> to vector<8x128xf32>
    %8 = vector.extract_strided_slice %6 {offsets = [8, 0], sizes = [8, 128], strides = [1, 1]} : vector<16x128xf32> to vector<8x128xf32>
    %9 = arith.subf %7, %8 : vector<8x128xf32>
    %10 = vector.extract_strided_slice %6 {offsets = [0, 0], sizes = [8, 128], strides = [1, 1]} : vector<16x128xf32> to vector<8x128xf32>
    %11 = vector.extract_strided_slice %5 {offsets = [8, 0], sizes = [8, 128], strides = [1, 1]} : vector<16x128xf32> to vector<8x128xf32>
    %12 = arith.addf %10, %11 : vector<8x128xf32>
    %c0_7 = arith.constant 0 : index
    %c0_8 = arith.constant 0 : index
    %13 = vector.load %arg3[%c0_7, %c0_8] : memref<8x128xf32, #tpu.memory_space<vmem>>, vector<8x128xf32>
    tpu.vector_store %arg3[%c0_7, %c0_8], %9 {strides = array<i32>} : memref<8x128xf32, #tpu.memory_space<vmem>>, vector<8x128xf32>,
    %c0_9 = arith.constant 0 : index
    %c0_10 = arith.constant 0 : index
    %14 = vector.load %arg4[%c0_9, %c0_10] : memref<8x128xf32, #tpu.memory_space<vmem>>, vector<8x128xf32>
    tpu.vector_store %arg4[%c0_9, %c0_10], %12 {strides = array<i32>} : memref<8x128xf32, #tpu.memory_space<vmem>>, vector<8x128xf32>,
    %c0_i32 = arith.constant 0 : i32
    %15 = arith.cmpi eq, %arg0, %c0_i32 : i32
    %16 = arith.extui %15 : i1 to i32
    %c0_i32_11 = arith.constant 0 : i32
    %17 = arith.cmpi ne, %16, %c0_i32_11 : i32
    scf.if %17 {
      %cst_38 = arith.constant 0.000000e+00 : f32
      %52 = vector.broadcast %cst_38 : f32 to vector<4x8x1xf32>
      %c0_39 = arith.constant 0 : index
      %c0_40 = arith.constant 0 : index
      %c0_41 = arith.constant 0 : index
      %53 = vector.load %arg5[%c0_39, %c0_40, %c0_41] : memref<4x8x1xf32, #tpu.memory_space<vmem>>, vector<4x8x1xf32>
      tpu.vector_store %arg5[%c0_39, %c0_40, %c0_41], %52 {strides = array<i32>} : memref<4x8x1xf32, #tpu.memory_space<vmem>>, vector<4x8x1xf32>,
    } else {
    }
    %c0_12 = arith.constant 0 : index
    %c0_13 = arith.constant 0 : index
    %c0_14 = arith.constant 0 : index
    %18 = vector.load %arg5[%c0_12, %c0_13, %c0_14] : memref<4x8x1xf32, #tpu.memory_space<vmem>>, vector<1x8x1xf32>
    %19 = vector.shape_cast %18 : vector<1x8x1xf32> to vector<8x1xf32>
    %cst_15 = arith.constant dense<0.000000e+00> : vector<8xf32>
    %20 = vector.multi_reduction <add>, %9, %cst_15 [1] : vector<8x128xf32> to vector<8xf32>
    %21 = vector.shape_cast %20 : vector<8xf32> to vector<8x1xf32>
    %22 = arith.addf %19, %21 : vector<8x1xf32>
    %c0_16 = arith.constant 0 : index
    %c0_17 = arith.constant 0 : index
    %c0_18 = arith.constant 0 : index
    %23 = vector.load %arg5[%c0_16, %c0_17, %c0_18] : memref<4x8x1xf32, #tpu.memory_space<vmem>>, vector<1x8x1xf32>
    %24 = vector.shape_cast %23 : vector<1x8x1xf32> to vector<8x1xf32>
    %25 = vector.shape_cast %22 : vector<8x1xf32> to vector<1x8x1xf32>
    tpu.vector_store %arg5[%c0_16, %c0_17, %c0_18], %25 {strides = array<i32>} : memref<4x8x1xf32, #tpu.memory_space<vmem>>, vector<1x8x1xf32>,
    %c1_19 = arith.constant 1 : index
    %c0_20 = arith.constant 0 : index
    %c0_21 = arith.constant 0 : index
    %26 = vector.load %arg5[%c1_19, %c0_20, %c0_21] : memref<4x8x1xf32, #tpu.memory_space<vmem>>, vector<1x8x1xf32>
    %27 = vector.shape_cast %26 : vector<1x8x1xf32> to vector<8x1xf32>
    %28 = arith.mulf %9, %9 : vector<8x128xf32>
    %cst_22 = arith.constant dense<0.000000e+00> : vector<8xf32>
    %29 = vector.multi_reduction <add>, %28, %cst_22 [1] : vector<8x128xf32> to vector<8xf32>
    %30 = vector.shape_cast %29 : vector<8xf32> to vector<8x1xf32>
    %31 = arith.addf %27, %30 : vector<8x1xf32>
    %c1_23 = arith.constant 1 : index
    %c0_24 = arith.constant 0 : index
    %c0_25 = arith.constant 0 : index
    %32 = vector.load %arg5[%c1_23, %c0_24, %c0_25] : memref<4x8x1xf32, #tpu.memory_space<vmem>>, vector<1x8x1xf32>
    %33 = vector.shape_cast %32 : vector<1x8x1xf32> to vector<8x1xf32>
    %34 = vector.shape_cast %31 : vector<8x1xf32> to vector<1x8x1xf32>
    tpu.vector_store %arg5[%c1_23, %c0_24, %c0_25], %34 {strides = array<i32>} : memref<4x8x1xf32, #tpu.memory_space<vmem>>, vector<1x8x1xf32>,
    %c2 = arith.constant 2 : index
    %c0_26 = arith.constant 0 : index
    %c0_27 = arith.constant 0 : index
    %35 = vector.load %arg5[%c2, %c0_26, %c0_27] : memref<4x8x1xf32, #tpu.memory_space<vmem>>, vector<1x8x1xf32>
    %36 = vector.shape_cast %35 : vector<1x8x1xf32> to vector<8x1xf32>
    %cst_28 = arith.constant dense<0.000000e+00> : vector<8xf32>
    %37 = vector.multi_reduction <add>, %12, %cst_28 [1] : vector<8x128xf32> to vector<8xf32>
    %38 = vector.shape_cast %37 : vector<8xf32> to vector<8x1xf32>
    %39 = arith.addf %36, %38 : vector<8x1xf32>
    %c2_29 = arith.constant 2 : index
    %c0_30 = arith.constant 0 : index
    %c0_31 = arith.constant 0 : index
    %40 = vector.load %arg5[%c2_29, %c0_30, %c0_31] : memref<4x8x1xf32, #tpu.memory_space<vmem>>, vector<1x8x1xf32>
    %41 = vector.shape_cast %40 : vector<1x8x1xf32> to vector<8x1xf32>
    %42 = vector.shape_cast %39 : vector<8x1xf32> to vector<1x8x1xf32>
    tpu.vector_store %arg5[%c2_29, %c0_30, %c0_31], %42 {strides = array<i32>} : memref<4x8x1xf32, #tpu.memory_space<vmem>>, vector<1x8x1xf32>,
    %c3 = arith.constant 3 : index
    %c0_32 = arith.constant 0 : index
    %c0_33 = arith.constant 0 : index
    %43 = vector.load %arg5[%c3, %c0_32, %c0_33] : memref<4x8x1xf32, #tpu.memory_space<vmem>>, vector<1x8x1xf32>
    %44 = vector.shape_cast %43 : vector<1x8x1xf32> to vector<8x1xf32>
    %45 = arith.mulf %12, %12 : vector<8x128xf32>
    %cst_34 = arith.constant dense<0.000000e+00> : vector<8xf32>
    %46 = vector.multi_reduction <add>, %45, %cst_34 [1] : vector<8x128xf32> to vector<8xf32>
    %47 = vector.shape_cast %46 : vector<8xf32> to vector<8x1xf32>
    %48 = arith.addf %44, %47 : vector<8x1xf32>
    %c3_35 = arith.constant 3 : index
    %c0_36 = arith.constant 0 : index
    %c0_37 = arith.constant 0 : index
    %49 = vector.load %arg5[%c3_35, %c0_36, %c0_37] : memref<4x8x1xf32, #tpu.memory_space<vmem>>, vector<1x8x1xf32>
    %50 = vector.shape_cast %49 : vector<1x8x1xf32> to vector<8x1xf32>
    %51 = vector.shape_cast %48 : vector<8x1xf32> to vector<1x8x1xf32>
    tpu.vector_store %arg5[%c3_35, %c0_36, %c0_37], %51 {strides = array<i32>} : memref<4x8x1xf32, #tpu.memory_space<vmem>>, vector<1x8x1xf32>,
    return
  }
  func.func @transform_0(%arg0: i32) -> (i32, i32, i32) {
    %c0_i32 = arith.constant 0 : i32
    %c0_i32_0 = arith.constant 0 : i32
    %c0_i32_1 = arith.constant 0 : i32
    return %c0_i32, %c0_i32_0, %arg0 : i32, i32, i32
  }
  func.func @transform_1(%arg0: i32) -> (i32, i32) {
    %c0_i32 = arith.constant 0 : i32
    %c0_i32_0 = arith.constant 0 : i32
    %c0_i32_1 = arith.constant 0 : i32
    return %c0_i32, %c0_i32_0 : i32, i32
  }
  func.func @transform_2(%arg0: i32) -> (i32, i32) {
    %c0_i32 = arith.constant 0 : i32
    %c0_i32_0 = arith.constant 0 : i32
    return %c0_i32, %arg0 : i32, i32
  }
  func.func @transform_3(%arg0: i32) -> (i32, i32) {
    %c0_i32 = arith.constant 0 : i32
    %c0_i32_0 = arith.constant 0 : i32
    return %c0_i32, %arg0 : i32, i32
  }
  func.func @transform_4(%arg0: i32) -> (i32, i32, i32) {
    %c0_i32 = arith.constant 0 : i32
    %c0_i32_0 = arith.constant 0 : i32
    %c0_i32_1 = arith.constant 0 : i32
    %c0_i32_2 = arith.constant 0 : i32
    return %c0_i32, %c0_i32_0, %c0_i32_1 : i32, i32, i32
  }
}

</mosaic_0001>

<bundles_post_ra>
// kernel: mul.157
= control target key start
LH: loop header
LB: loop body
LE: loop exit
PB: predicated region body
PF: predicated region fallthrough
CT: control target
= control target key end

     0   :  { %s34_s0 = inlined_call_operand.vmem [shape: f32[4,1], index: 0, kind: input, shape index: {}]   ;;  %s35_s1 = inlined_call_operand.vmem [shape: f32[4,1], index: 1, kind: input, shape index: {}]   ;;  %s36_s2 = inlined_call_operand.vmem [shape: f32[4,1], index: 2, kind: output, shape index: {}]  }
   0x1   :  { %v3_v0 = vld [vmem:[%s34_s0] sm:$0xf] }
   0x2   :  { %v4_v1 = vld [vmem:[%s35_s1] sm:$0xf] }
   0x3   :  { %v7_v2 = vmul.f32 %v4_v1, %v3_v0 }
   0x5   :  { %9 = vst [vmem:[%s36_s2] sm:$0xf] %v7_v2 }

// kernel: _lambda_.4
= control target key start
LH: loop header
LB: loop body
LE: loop exit
PB: predicated region body
PF: predicated region fallthrough
CT: control target
= control target key end

     0   :  { %vm21_vm0 = vcmask 130048   ;;  %vm186_vm1 = vcmask 7168   ;;  %v264_v6 = vmov 0.0   ;;  %s358_s0 = inlined_call_operand.vmem [shape: f32[2,16,128], index: 0, kind: input, shape index: {}]   ;;  %s359_s1 = inlined_call_operand.vmem [shape: f32[16,16], index: 1, kind: input, shape index: {}]   ;;  %s360_s4 = inlined_call_operand.vmem [shape: f32[4,8,1], index: 4, kind: output, shape index: {2}]   ;;  %s361_s2 = inlined_call_operand.vmem [shape: f32[8,128], index: 2, kind: output, shape index: {0}]   ;;  %s362_s3 = inlined_call_operand.vmem [shape: f32[8,128], index: 3, kind: output, shape index: {1}]  }
   0x1   :  { %v17_v0 = vld [vmem:[%s358_s0 + $0x8] sm:$0xff]  ;;  %v230_v1 = vld [vmem:[%s358_s0 + $0x18] sm:$0xff]  ;;  %v16_v2 = vld [vmem:[%s358_s0] sm:$0xff]  ;;  %189 = vst.msk [vmem:[%s360_s4 + $0x10] sm:$0xff] %vm186_vm1, %v264_v6 }
   0x2   :  { %249 = vmatprep.subr.mxu0 %v17_v0  ;;  %256 = vmatprep.subr.mxu1 %v230_v1  ;;  %v229_v3 = vld [vmem:[%s358_s0 + $0x10] sm:$0xff]  ;;  %v14_v4 = vld [vmem:[%s359_s1] sm:$0xff]  ;;  %v15_v5 = vld [vmem:[%s359_s1 + $0x8] sm:$0xff]  ;;  %187 = vst.msk [vmem:[%s360_s4] sm:$0xff] %vm186_vm1, %v264_v6 }
   0x3   :  { %250 = vmatpush3.msra.mxu0 %v17_v0  ;;  %257 = vmatpush3.msra.mxu1 %v230_v1  ;;  %188 = vst.msk [vmem:[%s360_s4 + $0x8] sm:$0xff] %vm186_vm1, %v264_v6  ;;  %190 = vst.msk [vmem:[%s360_s4 + $0x18] sm:$0xff] %vm186_vm1, %v264_v6 }
   0x4   :  { %251 = vmatprep.subr.mxu0 %v16_v2  ;;  %258 = vmatprep.subr.mxu1 %v229_v3 }
   0x5   :  { %252 = vmatpush3.msra.mxu0 %v16_v2  ;;  %253 = vmatprep.mubr.msk.f32.mxu0 %vm21_vm0, %v14_v4 }
   0x6   :  { %259 = vmatpush3.msra.mxu1 %v229_v3  ;;  %260 = vmatprep.mubr.msk.f32.mxu1 %vm21_vm0, %v14_v4 }
   0x7   :  { %254 = vmatmul.mubr.msk.f32.vlgmr.msra.gmra.mxu0 %vm21_vm0, %v15_v5  ;;  %261 = vmatmul.mubr.msk.f32.vlgmr.msra.gmra.mxu1 %vm21_vm0, %v15_v5 }
   0x8   :  { %v237_v15 = vld [vmem:[%s360_s4 + $0x10] sm:$0xff] }
   0x9   :  { %v191_v16 = vld [vmem:[%s360_s4] sm:$0xff] }
   0xa   :  { %v239_v21 = vld [vmem:[%s360_s4 + $0x18] sm:$0xff]  ;;  %v235_v22 = vld [vmem:[%s360_s4 + $0x8] sm:$0xff] }
  0xc7   :  { %v255_v7 = vpop.f32.mrf.mxu0  ;;  %v262_v8 = vpop.f32.mrf.mxu1 }
  0xc9   :  { %v94_v9 = vpop.f32.mrf.mxu0  ;;  %v169_v10 = vpop.f32.mrf.mxu1 }
  0xca   :  { %v178_v11 = vsub.f32 %v94_v9, %v262_v8  ;;  %v179_v12 = vadd.f32 %v255_v7, %v169_v10 }
  0xcc   :  { %180 = vst [vmem:[%s361_s2] sm:$0xff] %v178_v11  ;;  %181 = vst [vmem:[%s362_s3] sm:$0xff] %v179_v12  ;;  %206 = vadd.xlane.f32.xlu1 %v179_v12  ;;  %192 = vadd.xlane.f32.xlu0 %v178_v11  ;;  %v212_v13 = vmul.f32 %v179_v12, %v179_v12  ;;  %v199_v14 = vmul.f32 %v178_v11, %v178_v11 }
  0xd0   :  { %213 = vadd.xlane.f32.xlu1 %v212_v13  ;;  %200 = vadd.xlane.f32.xlu0 %v199_v14 }
 0x155   :  { %v207_v17 = vpop.xlane.xlu1 %206  ;;  %v193_v18 = vpop.xlane.xlu0 %192 }
 0x156   :  { %v208_v19 = vadd.f32 %v237_v15, %v207_v17  ;;  %v194_v20 = vadd.f32 %v193_v18, %v191_v16 }
 0x158   :  { %238 = vst.msk [vmem:[%s360_s4 + $0x10] sm:$0xff] %vm186_vm1, %v208_v19  ;;  %196 = vst.msk [vmem:[%s360_s4] sm:$0xff] %vm186_vm1, %v194_v20 }
 0x159   :  { %v214_v23 = vpop.xlane.xlu1 %213  ;;  %v201_v24 = vpop.xlane.xlu0 %200 }
 0x15a   :  { %v215_v25 = vadd.f32 %v239_v21, %v214_v23  ;;  %v202_v26 = vadd.f32 %v235_v22, %v201_v24 }
 0x15c   :  { %240 = vst.msk [vmem:[%s360_s4 + $0x18] sm:$0xff] %vm186_vm1, %v215_v25  ;;  %236 = vst.msk [vmem:[%s360_s4 + $0x8] sm:$0xff] %vm186_vm1, %v202_v26 }

// kernel: _lambda_.5
= control target key start
LH: loop header
LB: loop body
LE: loop exit
PB: predicated region body
PF: predicated region fallthrough
CT: control target
= control target key end

     0   :  { %v81_v0 = vmov 0   ;;  %v82_v3 = vmov 1   ;;  %s139_s3 = inlined_call_operand.vmem [shape: f32[8,2], index: 3, kind: input, shape index: {}]   ;;  %s140_s2 = inlined_call_operand.vmem [shape: f32[8,2], index: 2, kind: input, shape index: {}]   ;;  %s141_s4 = inlined_call_operand.vmem [shape: f32[8,2], index: 4, kind: input, shape index: {}]   ;;  %s142_s0 = inlined_call_operand.vmem [shape: f32[8,128], index: 0, kind: input, shape index: {}]   ;;  %s143_s1 = inlined_call_operand.vmem [shape: f32[8,128], index: 1, kind: input, shape index: {}]   ;;  %s144_s6 = inlined_call_operand.vmem [shape: f32[8,128], index: 6, kind: output, shape index: {1}]   ;;  %s145_s5 = inlined_call_operand.vmem [shape: f32[8,128], index: 5, kind: output, shape index: {0}]  }
   0x1   :  { %78 = vset.pattern.permute.xlu1 %v81_v0  ;;  %76 = vset.pattern.permute.xlu0 %v81_v0  ;;  %v31_v1 = vld [vmem:[%s139_s3] sm:$0xff] }
   0x2   :  { %v24_v2 = vld [vmem:[%s140_s2] sm:$0xff]  ;;  %34 = vperm.xlu1 %78, %v31_v1  }
   0x3   :  { %27 = vperm.xlu0 %76, %v24_v2   ;;  %v48_v4 = vld [vmem:[%s141_s4] sm:$0xff] }
   0x4   :  { %v22_v7 = vld [vmem:[%s142_s0] sm:$0xff] }
   0x5   :  { %v23_v8 = vld [vmem:[%s143_s1] sm:$0xff] }
   0x6   :  { %79 = vset.pattern.permute.xlu1 %v82_v3 }
   0x7   :  { %77 = vset.pattern.permute.xlu0 %v82_v3  ;;  %44 = vperm.xlu1 %79, %v31_v1  }
   0x8   :  { %39 = vperm.xlu0 %77, %v24_v2  }
   0xb   :  { %80 = vset.pattern.permute.xlu1 %v81_v0 }
   0xc   :  { %60 = vperm.xlu0 %77, %v48_v4   ;;  %52 = vperm.xlu1 %80, %v48_v4  }
  0x7d   :  { %v35_v5 = vpop.permute.xlu1 %34 }
  0x7e   :  { %v28_v6 = vpop.permute.xlu0 %27 }
  0x7f   :  { %v30_v9 = vmul.f32 %v28_v6, %v22_v7 }
  0x81   :  { %v37_v13 = vadd.f32 %v35_v5, %v30_v9 }
  0x82   :  { %v45_v10 = vpop.permute.xlu1 %44 }
  0x83   :  { %v40_v11 = vpop.permute.xlu0 %39  ;;  %vm49_vm1 = vcmp.ge.f32.partialorder %v37_v13, 0.0 }
  0x84   :  { %v42_v12 = vmul.f32 %v40_v11, %v23_v8 }
  0x86   :  { %v47_v14 = vadd.f32 %v45_v10, %v42_v12 }
  0x87   :  { %v61_v15 = vpop.permute.xlu0 %60  ;;  %v53_v17 = vpop.permute.xlu1 %52 }
  0x88   :  { %vm58_vm0 = vcmp.ge.f32.partialorder %v47_v14, 0.0  ;;  %v63_v16 = vmul.f32 %v61_v15, %v47_v14  ;;  %v55_v18 = vmul.f32 %v53_v17, %v37_v13 }
  0x8a   :  { %v64_v19 = vsel %vm58_vm0, %v47_v14, %v63_v16  ;;  %v56_v20 = vsel %vm49_vm1, %v37_v13, %v55_v18 }
  0x8b   :  { %65 = vst [vmem:[%s144_s6] sm:$0xff] %v64_v19  ;;  %57 = vst [vmem:[%s145_s5] sm:$0xff] %v56_v20 }

// kernel: _lambda_.6
= control target key start
LH: loop header
LB: loop body
LE: loop exit
PB: predicated region body
PF: predicated region fallthrough
CT: control target
= control target key end

     0   :  { %vm27_vm0 = vcmask 326656   ;;  %vm192_vm1 = vcmask 7168   ;;  %v291_v12 = vmov 0.0   ;;  %s403_s0 = inlined_call_operand.vmem [shape: f32[2,40,128], index: 0, kind: input, shape index: {}]   ;;  %s404_s1 = inlined_call_operand.vmem [shape: f32[16,40], index: 1, kind: input, shape index: {}]   ;;  %s405_s4 = inlined_call_operand.vmem [shape: f32[4,8,1], index: 4, kind: output, shape index: {2}]   ;;  %s406_s2 = inlined_call_operand.vmem [shape: f32[8,128], index: 2, kind: output, shape index: {0}]   ;;  %s407_s3 = inlined_call_operand.vmem [shape: f32[8,128], index: 3, kind: output, shape index: {1}]  }
   0x1   :  { %v20_v0 = vld [vmem:[%s403_s0 + $0x20] sm:$0xff]  ;;  %v239_v1 = vld [vmem:[%s403_s0 + $0x48] sm:$0xff]  ;;  %v19_v2 = vld [vmem:[%s403_s0 + $0x18] sm:$0xff]  ;;  %195 = vst.msk [vmem:[%s405_s4 + $0x10] sm:$0xff] %vm192_vm1, %v291_v12 }
   0x2   :  { %264 = vmatprep.subr.mxu0 %v20_v0  ;;  %277 = vmatprep.subr.mxu1 %v239_v1  ;;  %v238_v3 = vld [vmem:[%s403_s0 + $0x40] sm:$0xff]  ;;  %v18_v4 = vld [vmem:[%s403_s0 + $0x10] sm:$0xff]  ;;  %v237_v5 = vld [vmem:[%s403_s0 + $0x38] sm:$0xff]  ;;  %193 = vst.msk [vmem:[%s405_s4] sm:$0xff] %vm192_vm1, %v291_v12 }
   0x3   :  { %265 = vmatpush3.msra.mxu0 %v20_v0  ;;  %278 = vmatpush3.msra.mxu1 %v239_v1  ;;  %v17_v6 = vld [vmem:[%s403_s0 + $0x8] sm:$0xff]  ;;  %v236_v7 = vld [vmem:[%s403_s0 + $0x30] sm:$0xff]  ;;  %v16_v8 = vld [vmem:[%s403_s0] sm:$0xff]  ;;  %194 = vst.msk [vmem:[%s405_s4 + $0x8] sm:$0xff] %vm192_vm1, %v291_v12 }
   0x4   :  { %266 = vmatprep.subr.mxu0 %v19_v2  ;;  %279 = vmatprep.subr.mxu1 %v238_v3  ;;  %v235_v9 = vld [vmem:[%s403_s0 + $0x28] sm:$0xff]  ;;  %v14_v10 = vld [vmem:[%s404_s1] sm:$0xff]  ;;  %196 = vst.msk [vmem:[%s405_s4 + $0x18] sm:$0xff] %vm192_vm1, %v291_v12 }
   0x5   :  { %267 = vmatpush3.msra.mxu0 %v19_v2  ;;  %280 = vmatpush3.msra.mxu1 %v238_v3  ;;  %v15_v11 = vld [vmem:[%s404_s1 + $0x8] sm:$0xff] }
   0x6   :  { %268 = vmatprep.subr.mxu0 %v18_v4  ;;  %281 = vmatprep.subr.mxu1 %v237_v5 }
   0x7   :  { %269 = vmatpush3.msra.mxu0 %v18_v4  ;;  %282 = vmatpush3.msra.mxu1 %v237_v5 }
   0x8   :  { %270 = vmatprep.subr.mxu0 %v17_v6  ;;  %283 = vmatprep.subr.mxu1 %v236_v7  ;;  %v246_v21 = vld [vmem:[%s405_s4 + $0x10] sm:$0xff] }
   0x9   :  { %271 = vmatpush3.msra.mxu0 %v17_v6  ;;  %284 = vmatpush3.msra.mxu1 %v236_v7  ;;  %v197_v22 = vld [vmem:[%s405_s4] sm:$0xff] }
   0xa   :  { %272 = vmatprep.subr.mxu0 %v16_v8  ;;  %285 = vmatprep.subr.mxu1 %v235_v9  ;;  %v244_v28 = vld [vmem:[%s405_s4 + $0x8] sm:$0xff] }
   0xb   :  { %273 = vmatpush3.msra.mxu0 %v16_v8  ;;  %274 = vmatprep.mubr.msk.f32.mxu0 %vm27_vm0, %v14_v10  ;;  %v248_v27 = vld [vmem:[%s405_s4 + $0x18] sm:$0xff] }
   0xc   :  { %286 = vmatpush3.msra.mxu1 %v235_v9  ;;  %287 = vmatprep.mubr.msk.f32.mxu1 %vm27_vm0, %v14_v10 }
   0xd   :  { %275 = vmatmul.mubr.msk.f32.vlgmr.msra.gmra.mxu0 %vm27_vm0, %v15_v11  ;;  %288 = vmatmul.mubr.msk.f32.vlgmr.msra.gmra.mxu1 %vm27_vm0, %v15_v11 }
  0xcd   :  { %v276_v13 = vpop.f32.mrf.mxu0  ;;  %v289_v14 = vpop.f32.mrf.mxu1 }
  0xcf   :  { %v100_v15 = vpop.f32.mrf.mxu0  ;;  %v175_v16 = vpop.f32.mrf.mxu1 }
  0xd0   :  { %v184_v17 = vsub.f32 %v100_v15, %v289_v14  ;;  %v185_v18 = vadd.f32 %v276_v13, %v175_v16 }
  0xd2   :  { %186 = vst [vmem:[%s406_s2] sm:$0xff] %v184_v17  ;;  %187 = vst [vmem:[%s407_s3] sm:$0xff] %v185_v18  ;;  %212 = vadd.xlane.f32.xlu1 %v185_v18  ;;  %198 = vadd.xlane.f32.xlu0 %v184_v17  ;;  %v218_v19 = vmul.f32 %v185_v18, %v185_v18  ;;  %v205_v20 = vmul.f32 %v184_v17, %v184_v17 }
  0xd6   :  { %219 = vadd.xlane.f32.xlu1 %v218_v19  ;;  %206 = vadd.xlane.f32.xlu0 %v205_v20 }
 0x15b   :  { %v213_v23 = vpop.xlane.xlu1 %212  ;;  %v199_v24 = vpop.xlane.xlu0 %198 }
 0x15c   :  { %v214_v25 = vadd.f32 %v246_v21, %v213_v23  ;;  %v200_v26 = vadd.f32 %v199_v24, %v197_v22 }
 0x15e   :  { %247 = vst.msk [vmem:[%s405_s4 + $0x10] sm:$0xff] %vm192_vm1, %v214_v25  ;;  %202 = vst.msk [vmem:[%s405_s4] sm:$0xff] %vm192_vm1, %v200_v26 }
 0x15f   :  { %v220_v29 = vpop.xlane.xlu1 %219  ;;  %v207_v30 = vpop.xlane.xlu0 %206 }
 0x160   :  { %v221_v31 = vadd.f32 %v248_v27, %v220_v29  ;;  %v208_v32 = vadd.f32 %v244_v28, %v207_v30 }
 0x162   :  { %249 = vst.msk [vmem:[%s405_s4 + $0x18] sm:$0xff] %vm192_vm1, %v221_v31  ;;  %245 = vst.msk [vmem:[%s405_s4 + $0x8] sm:$0xff] %vm192_vm1, %v208_v32 }

</bundles_post_ra>
